<compile_context>
chip_gen: v5e
topology: v5e:2x2
jax: 0.10.0
libtpu: 0.0.40
codegen_flags: <defaults>
</compile_context>

<pallas_src>
import jax
import jax.numpy as jnp
from jax import lax
from jax.experimental import pallas as pl
from jax.experimental.pallas import tpu as pltpu

EPS = 1e-07
_LANES = 128


def _round_up(a, b):
    return ((a + b - 1) // b) * b


def _vmem_capacity_bytes():
    """Physical VMEM of the local TPU generation (fallback 64 MiB, safe everywhere)."""
    try:
        info = pltpu.get_tpu_info()
    except Exception:
        return 64 * 1024 * 1024
    for attr in ("vmem_capacity_bytes", "vmem_size_bytes", "vmem_bytes"):
        v = getattr(info, attr, None)
        if v:
            try:
                return int(v)
            except (TypeError, ValueError):
                pass
    return 64 * 1024 * 1024


def _make_kernel(c, chunk_rows, n_chunks_full, n_chunks_last, num_t,
                 tiles_per_split, n_ghost, use_vreg_acc, max_unroll):
    """Kernel over one (C, tile_rows, 128) block of x / target for one batch element."""
    need_branches = (n_chunks_last != n_chunks_full) or (n_ghost > 0)

    def kernel(x_ref, t_ref, inter_ref, card_ref):
        # x_ref, t_ref      : (C, tile_rows, 128) native-dtype input tiles in VMEM
        # inter_ref/card_ref: (C, chunk_rows, 128) f32 output blocks, resident
        #                     across the tile (reduction) axis -> accumulators.
        t_idx = pl.program_id(2)

        @pl.when(t_idx == 0)
        def _():
            inter_ref[...] = jnp.zeros_like(inter_ref)
            card_ref[...] = jnp.zeros_like(card_ref)

        def load_chunk(k):
            off = pl.multiple_of(k * chunk_rows, chunk_rows)
            # In-kernel cast to f32 (VPU, hidden under the DMA); accumulation
            # is f32 regardless of the input dtype.
            xk = x_ref[:, pl.ds(off, chunk_rows), :].astype(jnp.float32)
            tk = t_ref[:, pl.ds(off, chunk_rows), :].astype(jnp.float32)
            return xk, tk

        def run_tile(n_chunks):
            if n_chunks <= 0:
                return
            unroll = max(1, min(max_unroll, n_chunks))
            if use_vreg_acc:
                # Vreg-carried partial sums: one VMEM RMW per tile, not per chunk.
                zero = jnp.zeros((c, chunk_rows, _LANES), jnp.float32)

                def body(k, carry):
                    acc_i, acc_c = carry
                    xk, tk = load_chunk(k)
                    return acc_i + xk * tk, acc_c + xk + tk

                acc_i, acc_c = lax.fori_loop(0, n_chunks, body, (zero, zero),
                                             unroll=unroll)
                inter_ref[...] += acc_i
                card_ref[...] += acc_c
            else:
                # Large C: accumulate straight into the resident VMEM blocks.
                def body(k, carry):
                    xk, tk = load_chunk(k)
                    inter_ref[...] += xk * tk
                    card_ref[...] += xk + tk
                    return carry

                lax.fori_loop(0, n_chunks, body, 0, unroll=unroll)

        if not need_branches:
            run_tile(n_chunks_full)
        else:
            # Global tile index across the (possibly split) tile axis.
            g = pl.program_id(0) * tiles_per_split + t_idx

            @pl.when(g < num_t - 1)
            def _():
                run_tile(n_chunks_full)

            @pl.when(g == num_t - 1)
            def _():
                run_tile(n_chunks_last)
            # g >= num_t: ghost tile of an odd split -> nothing to do.

    return kernel


def dice_loss_both_weighted(x, target, weight, *, _force_tile_rows=None):
    """x, target: (N, C, *spatial); weight: scalar.  Returns scalar f32 loss."""
    assert x.shape == target.shape, "x and target must have the same shape"
    assert x.ndim >= 2, "expected (N, C, spatial...) inputs"
    n, c = x.shape[0], x.shape[1]
    m = 1
    for d in x.shape[2:]:
        m *= d

    # Free trailing-dim merge (no transpose, no dtype copy).
    x3 = x.reshape(n, c, m)
    t3 = target.reshape(n, c, m)

    itemsize_x = jnp.dtype(x3.dtype).itemsize
    itemsize_t = jnp.dtype(t3.dtype).itemsize
    # Native sublane multiple of the narrowest input dtype (f32:8, bf16:16, int8:32).
    chunk_rows = max(8, 32 // min(itemsize_x, itemsize_t))

    # Fold the spatial axis into (rows, 128): fully dense vregs / tiles for any C.
    # Zero padding is exact for both intersection (0*0) and cardinality (0+0).
    align = chunk_rows * _LANES
    m_pad = _round_up(m, align)
    if m_pad != m:
        x3 = jnp.pad(x3, ((0, 0), (0, 0), (0, m_pad - m)))
        t3 = jnp.pad(t3, ((0, 0), (0, 0), (0, m_pad - m)))
    r = m_pad // _LANES
    x4 = x3.reshape(n, c, r, _LANES)
    t4 = t3.reshape(n, c, r, _LANES)

    # Generation-aware VMEM budget (covers 2 inputs x 2 pipeline buffers).
    vmem_cap = _vmem_capacity_bytes()
    if vmem_cap <= 80 * 1024 * 1024:          # v7x (64 MiB) or unknown -> conservative
        input_budget, vmem_limit = 20 * 1024 * 1024, 48 * 1024 * 1024
    else:                                     # v5e / v6e (128 MiB physical)
        input_budget, vmem_limit = 32 * 1024 * 1024, 64 * 1024 * 1024

    bytes_per_row = c * _LANES * (itemsize_x + itemsize_t)
    max_tile_rows = max(chunk_rows, input_budget // (2 * bytes_per_row))
    tile_rows = max(chunk_rows, min(r, (max_tile_rows // chunk_rows) * chunk_rows))
    if _force_tile_rows is not None:          # test hook for small shapes
        tile_rows = max(chunk_rows,
                        min(r, (_force_tile_rows // chunk_rows) * chunk_rows))

    num_t = -(-r // tile_rows)
    last_rows = r - (num_t - 1) * tile_rows    # multiple of chunk_rows by construction
    n_chunks_full = tile_rows // chunk_rows
    n_chunks_last = last_rows // chunk_rows

    # v7x megacore: batch is the parallel axis; if N == 1, split the tile axis in
    # two parallel halves so both TensorCores get work (no effect on 1-TC chips).
    n_split = 2 if (n == 1 and num_t >= 2) else 1
    tiles_per_split = -(-num_t // n_split)
    n_ghost = n_split * tiles_per_split - num_t

    # Vreg-carried accumulators only while 2 accumulators + 2 loaded f32 chunks
    # fit comfortably in the 64-vreg file; otherwise accumulate into VMEM.
    use_vreg_acc = (c * chunk_rows) <= 64

    kernel = _make_kernel(c, chunk_rows, n_chunks_full, n_chunks_last, num_t,
                          tiles_per_split, n_ghost, use_vreg_acc, max_unroll=8)

    if n_ghost > 0:
        def in_map(s, b, t):
            # Clamp ghost tiles of the split axis so their (unused) block DMA
            # stays a normal in-range block; the kernel skips their compute.
            return (b, 0, jnp.minimum(s * tiles_per_split + t, num_t - 1), 0)
    else:
        def in_map(s, b, t):
            return (b, 0, s * tiles_per_split + t, 0)

    def out_map(s, b, t):
        return (s, b, 0, 0, 0)

    in_block = (pl.Squeezed(), c, tile_rows, _LANES)
    out_block = (pl.Squeezed(), pl.Squeezed(), c, chunk_rows, _LANES)

    # TODO(synk): optionally sweep pl.Buffered(3) on the input specs on v6e
    # (keep only if it measures faster and the VMEM limit allows).
    inter_parts, card_parts = pl.pallas_call(
        kernel,
        out_shape=(
            jax.ShapeDtypeStruct((n_split, n, c, chunk_rows, _LANES), jnp.float32),
            jax.ShapeDtypeStruct((n_split, n, c, chunk_rows, _LANES), jnp.float32),
        ),
        grid_spec=pltpu.PrefetchScalarGridSpec(
            num_scalar_prefetch=0,
            grid=(n_split, n, tiles_per_split),
            in_specs=[
                pl.BlockSpec(in_block, in_map),
                pl.BlockSpec(in_block, in_map),
            ],
            out_specs=(
                pl.BlockSpec(out_block, out_map),
                pl.BlockSpec(out_block, out_map),
            ),
        ),
        compiler_params=pltpu.CompilerParams(
            dimension_semantics=("parallel", "parallel", "arbitrary"),
            vmem_limit_bytes=vmem_limit,
        ),
    )(x4, t4)

    # Tiny epilogue in plain JAX: final cross-lane / cross-batch reduce, dice,
    # min / mean over classes and the weighted combination.
    intersection = jnp.sum(inter_parts, axis=(0, 1, 3, 4))   # (C,)
    cardinality = jnp.sum(card_parts, axis=(0, 1, 3, 4))     # (C,)
    dice = 2.0 * intersection / (cardinality + EPS)
    w = jnp.asarray(weight, jnp.float32)
    return (1.0 - w) * (1.0 - jnp.min(dice)) + w * (1.0 - jnp.mean(dice))


def _reference(x, target, weight):
    """Pure-JAX mirror of the PyTorch module."""
    target = target.astype(x.dtype)
    dims = (0,) + tuple(range(2, target.ndim))
    intersection = jnp.sum(x * target, dims)
    cardinality = jnp.sum(x + target, dims)
    dice = 2.0 * intersection / (cardinality + EPS)
    return (1.0 - weight) * (1.0 - jnp.min(dice)) + weight * (1.0 - jnp.mean(dice))


if __name__ == "__main__":
    def run_case(key, n, c, h, w, weight, **kw):
        kx, kt = jax.random.split(key)
        # x: soft predictions in [0, 1]; target: one-hot labels along channels.
        x = jax.nn.softmax(jax.random.normal(kx, (n, c, h, w), jnp.float32), axis=1)
        labels = jax.random.randint(kt, (n, h, w), 0, c)
        target = jax.nn.one_hot(labels, c, axis=1, dtype=jnp.float32)
        loss = jax.block_until_ready(dice_loss_both_weighted(x, target, weight, **kw))
        ref = jax.block_until_ready(_reference(x, target, weight))
        assert jnp.allclose(loss, ref, atol=1e-5, rtol=1e-5), \
            ((n, c, h, w), float(loss), float(ref))

    k1, k2, k3 = jax.random.split(jax.random.PRNGKey(0), 3)
    # Main case: vreg-carried accumulators, single tile per batch element.
    run_case(k1, 2, 4, 16, 16, 0.3)
    # N=1 with several tiles: exercises the tile-split (megacore) axis,
    # the partial last tile and the ghost-tile skip (forced small tiles).
    run_case(k2, 1, 5, 50, 100, 0.7, _force_tile_rows=16)
    # Larger C: exercises the VMEM read-modify-write accumulation path.
    run_case(k3, 2, 12, 8, 16, 0.5)
    print("KERNEL_OK")
</pallas_src>

<mosaic_0001>
module attributes {stable_mosaic.version = 11 : i64} {
  func.func @kernel(%arg0: i32, %arg1: i32, %arg2: i32, %arg3: memref<1x4x8x128xf32, #tpu.memory_space<vmem>>, %arg4: memref<1x4x8x128xf32, #tpu.memory_space<vmem>>, %arg5: memref<1x1x4x8x128xf32, #tpu.memory_space<vmem>>, %arg6: memref<1x1x4x8x128xf32, #tpu.memory_space<vmem>>) attributes {dimension_semantics = [#tpu.dimension_semantics<parallel>, #tpu.dimension_semantics<parallel>, #tpu.dimension_semantics<arbitrary>], iteration_bounds = array<i64: 1, 2, 1>, scalar_prefetch = 0 : i64, scratch_operands = 0 : i64, tpu.core_type = #tpu.core_type<tc>, window_params = [{transform_indices = @transform_0, window_bounds = array<i64: 1, 4, 8, 128>}, {transform_indices = @transform_1, window_bounds = array<i64: 1, 4, 8, 128>}, {transform_indices = @transform_2, window_bounds = array<i64: 1, 1, 4, 8, 128>}, {transform_indices = @transform_3, window_bounds = array<i64: 1, 1, 4, 8, 128>}]} {
    %c0_i32 = arith.constant 0 : i32
    %0 = arith.cmpi eq, %arg2, %c0_i32 : i32
    %1 = arith.extui %0 : i1 to i32
    %c0_i32_0 = arith.constant 0 : i32
    %2 = arith.cmpi ne, %1, %c0_i32_0 : i32
    scf.if %2 {
      %cst_27 = arith.constant 0.000000e+00 : f32
      %28 = vector.broadcast %cst_27 : f32 to vector<4x8x128xf32>
      %c0_28 = arith.constant 0 : index
      %c0_29 = arith.constant 0 : index
      %c0_30 = arith.constant 0 : index
      %c0_31 = arith.constant 0 : index
      %c0_32 = arith.constant 0 : index
      %29 = vector.load %arg5[%c0_28, %c0_29, %c0_30, %c0_31, %c0_32] : memref<1x1x4x8x128xf32, #tpu.memory_space<vmem>>, vector<1x1x4x8x128xf32>
      %30 = vector.shape_cast %29 : vector<1x1x4x8x128xf32> to vector<4x8x128xf32>
      %31 = vector.shape_cast %28 : vector<4x8x128xf32> to vector<1x1x4x8x128xf32>
      tpu.vector_store %arg5[%c0_28, %c0_29, %c0_30, %c0_31, %c0_32], %31 {strides = array<i32>} : memref<1x1x4x8x128xf32, #tpu.memory_space<vmem>>, vector<1x1x4x8x128xf32>,
      %cst_33 = arith.constant 0.000000e+00 : f32
      %32 = vector.broadcast %cst_33 : f32 to vector<4x8x128xf32>
      %c0_34 = arith.constant 0 : index
      %c0_35 = arith.constant 0 : index
      %c0_36 = arith.constant 0 : index
      %c0_37 = arith.constant 0 : index
      %c0_38 = arith.constant 0 : index
      %33 = vector.load %arg6[%c0_34, %c0_35, %c0_36, %c0_37, %c0_38] : memref<1x1x4x8x128xf32, #tpu.memory_space<vmem>>, vector<1x1x4x8x128xf32>
      %34 = vector.shape_cast %33 : vector<1x1x4x8x128xf32> to vector<4x8x128xf32>
      %35 = vector.shape_cast %32 : vector<4x8x128xf32> to vector<1x1x4x8x128xf32>
      tpu.vector_store %arg6[%c0_34, %c0_35, %c0_36, %c0_37, %c0_38], %35 {strides = array<i32>} : memref<1x1x4x8x128xf32, #tpu.memory_space<vmem>>, vector<1x1x4x8x128xf32>,
    } else {
    }
    %cst = arith.constant 0.000000e+00 : f32
    %3 = vector.broadcast %cst : f32 to vector<4x8x128xf32>
    %c0_i32_1 = arith.constant 0 : i32
    %c8_i32 = arith.constant 8 : i32
    %4 = arith.muli %c0_i32_1, %c8_i32 : i32
    %5 = tpu.assume_multiple %4, 8 : i32
    %c0 = arith.constant 0 : index
    %c0_2 = arith.constant 0 : index
    %6 = arith.index_cast %5 : i32 to index
    %c0_3 = arith.constant 0 : index
    %7 = vector.load %arg3[%c0, %c0_2, %6, %c0_3] : memref<1x4x8x128xf32, #tpu.memory_space<vmem>>, vector<1x4x8x128xf32>
    %8 = vector.shape_cast %7 : vector<1x4x8x128xf32> to vector<4x8x128xf32>
    %c0_4 = arith.constant 0 : index
    %c0_5 = arith.constant 0 : index
    %9 = arith.index_cast %5 : i32 to index
    %c0_6 = arith.constant 0 : index
    %10 = vector.load %arg4[%c0_4, %c0_5, %9, %c0_6] : memref<1x4x8x128xf32, #tpu.memory_space<vmem>>, vector<1x4x8x128xf32>
    %11 = vector.shape_cast %10 : vector<1x4x8x128xf32> to vector<4x8x128xf32>
    %12 = arith.mulf %8, %11 : vector<4x8x128xf32>
    %13 = arith.addf %3, %12 : vector<4x8x128xf32>
    %14 = arith.addf %3, %8 : vector<4x8x128xf32>
    %15 = arith.addf %14, %11 : vector<4x8x128xf32>
    %c1_i32 = arith.constant 1 : i32
    %c0_7 = arith.constant 0 : index
    %c0_8 = arith.constant 0 : index
    %c0_9 = arith.constant 0 : index
    %c0_10 = arith.constant 0 : index
    %c0_11 = arith.constant 0 : index
    %16 = vector.load %arg5[%c0_7, %c0_8, %c0_9, %c0_10, %c0_11] : memref<1x1x4x8x128xf32, #tpu.memory_space<vmem>>, vector<1x1x4x8x128xf32>
    %17 = vector.shape_cast %16 : vector<1x1x4x8x128xf32> to vector<4x8x128xf32>
    %18 = arith.addf %17, %13 : vector<4x8x128xf32>
    %c0_12 = arith.constant 0 : index
    %c0_13 = arith.constant 0 : index
    %c0_14 = arith.constant 0 : index
    %c0_15 = arith.constant 0 : index
    %c0_16 = arith.constant 0 : index
    %19 = vector.load %arg5[%c0_12, %c0_13, %c0_14, %c0_15, %c0_16] : memref<1x1x4x8x128xf32, #tpu.memory_space<vmem>>, vector<1x1x4x8x128xf32>
    %20 = vector.shape_cast %19 : vector<1x1x4x8x128xf32> to vector<4x8x128xf32>
    %21 = vector.shape_cast %18 : vector<4x8x128xf32> to vector<1x1x4x8x128xf32>
    tpu.vector_store %arg5[%c0_12, %c0_13, %c0_14, %c0_15, %c0_16], %21 {strides = array<i32>} : memref<1x1x4x8x128xf32, #tpu.memory_space<vmem>>, vector<1x1x4x8x128xf32>,
    %c0_17 = arith.constant 0 : index
    %c0_18 = arith.constant 0 : index
    %c0_19 = arith.constant 0 : index
    %c0_20 = arith.constant 0 : index
    %c0_21 = arith.constant 0 : index
    %22 = vector.load %arg6[%c0_17, %c0_18, %c0_19, %c0_20, %c0_21] : memref<1x1x4x8x128xf32, #tpu.memory_space<vmem>>, vector<1x1x4x8x128xf32>
    %23 = vector.shape_cast %22 : vector<1x1x4x8x128xf32> to vector<4x8x128xf32>
    %24 = arith.addf %23, %15 : vector<4x8x128xf32>
    %c0_22 = arith.constant 0 : index
    %c0_23 = arith.constant 0 : index
    %c0_24 = arith.constant 0 : index
    %c0_25 = arith.constant 0 : index
    %c0_26 = arith.constant 0 : index
    %25 = vector.load %arg6[%c0_22, %c0_23, %c0_24, %c0_25, %c0_26] : memref<1x1x4x8x128xf32, #tpu.memory_space<vmem>>, vector<1x1x4x8x128xf32>
    %26 = vector.shape_cast %25 : vector<1x1x4x8x128xf32> to vector<4x8x128xf32>
    %27 = vector.shape_cast %24 : vector<4x8x128xf32> to vector<1x1x4x8x128xf32>
    tpu.vector_store %arg6[%c0_22, %c0_23, %c0_24, %c0_25, %c0_26], %27 {strides = array<i32>} : memref<1x1x4x8x128xf32, #tpu.memory_space<vmem>>, vector<1x1x4x8x128xf32>,
    return
  }
  func.func @transform_0(%arg0: i32, %arg1: i32, %arg2: i32) -> (i32, i32, i32, i32) {
    %c1_i32 = arith.constant 1 : i32
    %0 = arith.muli %arg0, %c1_i32 : i32
    %1 = arith.addi %0, %arg2 : i32
    %c0_i32 = arith.constant 0 : i32
    %c0_i32_0 = arith.constant 0 : i32
    %c0_i32_1 = arith.constant 0 : i32
    return %arg1, %c0_i32, %1, %c0_i32_0 : i32, i32, i32, i32
  }
  func.func @transform_1(%arg0: i32, %arg1: i32, %arg2: i32) -> (i32, i32, i32, i32) {
    %c1_i32 = arith.constant 1 : i32
    %0 = arith.muli %arg0, %c1_i32 : i32
    %1 = arith.addi %0, %arg2 : i32
    %c0_i32 = arith.constant 0 : i32
    %c0_i32_0 = arith.constant 0 : i32
    %c0_i32_1 = arith.constant 0 : i32
    return %arg1, %c0_i32, %1, %c0_i32_0 : i32, i32, i32, i32
  }
  func.func @transform_2(%arg0: i32, %arg1: i32, %arg2: i32) -> (i32, i32, i32, i32, i32) {
    %c0_i32 = arith.constant 0 : i32
    %c0_i32_0 = arith.constant 0 : i32
    %c0_i32_1 = arith.constant 0 : i32
    %c0_i32_2 = arith.constant 0 : i32
    return %arg0, %arg1, %c0_i32, %c0_i32_0, %c0_i32_1 : i32, i32, i32, i32, i32
  }
  func.func @transform_3(%arg0: i32, %arg1: i32, %arg2: i32) -> (i32, i32, i32, i32, i32) {
    %c0_i32 = arith.constant 0 : i32
    %c0_i32_0 = arith.constant 0 : i32
    %c0_i32_1 = arith.constant 0 : i32
    %c0_i32_2 = arith.constant 0 : i32
    return %arg0, %arg1, %c0_i32, %c0_i32_0, %c0_i32_1 : i32, i32, i32, i32, i32
  }
}

</mosaic_0001>

<bundles_post_ra>
// kernel: tpu_custom_call.1
= control target key start
LH: loop header
LB: loop body
LE: loop exit
PB: predicated region body
PF: predicated region fallthrough
CT: control target
= control target key end

     0   :  { %s1014_s0 = inlined_call_operand.hbm [shape: f32[2,4,8,128], index: 0, kind: input, shape index: {}]   ;;  %s1015_s1 = inlined_call_operand.hbm [shape: f32[2,4,8,128], index: 1, kind: input, shape index: {}]   ;;  %s1016_s2 = inlined_call_operand.hbm [shape: f32[1,2,4,8,128], index: 2, kind: output, shape index: {0}]   ;;  %s1017_s3 = inlined_call_operand.hbm [shape: f32[1,2,4,8,128], index: 3, kind: output, shape index: {1}]  }
   0x1   :  { %1018 = sst [smem:[#allocation14_spill]] %s1014_s0 }
   0x2   :  { %9 = vsyncpa [#allocation3], 0 }
   0x3   :  { %11 = vsyncpa [#allocation3 + $0x1], 0 }
   0x4   :  { %12 = vsyncpa [#allocation6], 0 }
   0x5   :  { %14 = vsyncpa [#allocation6 + $0x1], 0 }
   0x6   :  { %15 = vsyncpa [#allocation4], 0 }
   0x7   :  { %17 = vsyncpa [#allocation4 + $0x1], 0 }
   0x8   :  { %18 = vsyncpa [#allocation9], 0 }
   0x9   :  { %20 = vsyncpa [#allocation9 + $0x1], 0  ;;  %s843_s12 = smov 0   ;;  %s845_s13 = smov 0  }
   0xa   :  { %s847_s14 = smov 0   ;;  %s849_s15 = smov 0  }
   0xb   :  { %s851_s16 = smov 0   ;;  %s853_s17 = smov 0  }
   0xc LB: > { %s535_s18 = sadd.s32 4294967295, %s817_s17   ;;  %s536_s19 = sadd.s32 4294967294, %s817_s17   ;;  %s817_s17 = sphi %s853_s17, %s26_s17   ;;  %s813_s16 = sphi %s851_s16, %s1029_s16   ;;  %s809_s15 = sphi %s849_s15, %s1028_s15   ;;  %s805_s14 = sphi %s847_s14, %s1027_s14   ;;  %s801_s13 = sphi %s845_s13, %s1026_s13   ;;  %s797_s12 = sphi %s843_s12, %s1025_s12  }
   0xd   : > { %s41_s20 = sadd.s32 1, %s813_s16  ;;  %s56_s21 = sadd.s32 1, %s805_s14 }
   0xe   : > { %p43_p0 = scmp.ge.s32.totalorder %s41_s20, 2  ;;  %p63_p1 = scmp.ne.s32.totalorder %s805_s14, %s801_s13 }
   0xf   : > { %p64_p2 = scmp.eq.s32.totalorder %s817_s17, 0  ;;  %p69_p3 = scmp.ne.s32.totalorder %s801_s13, %s797_s12 }
  0x10   : > { %s1031_s20 = smov (%p43_p0, %s41_s20), 0  ;;  %p70_p5 = scmp.eq.s32.totalorder %s535_s18, 0 }
  0x11   : > { %p884_p4 = por %p64_p2, %p63_p1  ;;  %s51_s23 = ssub.s32 %s813_s16, %s1031_s20 }
  0x12   : > { %p125_p6 = scmp.eq.s32.totalorder %s535_s18, 1  ;;  %p54_p7 = scmp.eq.s32.totalorder %s51_s23, 0 }
  0x13   : > { %p890_p8 = por %p70_p5, %p69_p3  ;;  %p131_p10 = scmp.eq.s32.totalorder %s536_s19, 1 }
  0x14   : > { %p894_p9 = por %p125_p6, %p63_p1  ;;  %p538_p12 = scmp.ge.s32.totalorder %s817_s17, 2 }
  0x15   : > { %s899_s26 = scalar_select %p54_p7, %s805_s14, %s56_s21  }
  0x16   : > { %p901_p11 = por %p131_p10, %p69_p3  ;;  %p584_p13 = scmp.lt.s32.totalorder %s817_s17, 2 }
  0x17   : > { %s908_s28 = sand.u32 1, %s805_s14   ;;  %s558_s30 = sshll.u32 %s813_s16, 5 }
  0x18   : > { %s539_s29 = sshll.u32 %s908_s28, 5  ;;  %s1023_s0 = sld [smem:[#allocation14_spill]] }
  0x19   : > { %s183_s7 = scalar_lea.vmem [#allocation2], %s539_s29  ;;  %p917_p0 = pnand %p584_p13, %p884_p4 }
  0x1a   : > { %s193_s8 = sshll.u32 %s183_s7, 4  ;;  %p545_p1 = scmp.ge.s32.totalorder %s817_s17, 1  ;;  %s194_s8 = int_to_ptr.vmem [resolvable:$true] %s193_s8 }
  0x1b   : > { %s180_s11 = scalar_lea.sflag [#allocation3], %s908_s28  ;;  %s819_s18 = smov 128  }
  0x1c   : > { %s820_s19 = smov 8   ;;  %p225_p2 = scmp.lt.s32.totalorder %s817_s17, 3 }
  0x1d   : > { %s214_s4 = scalar_lea.hbm %s1015_s1, %s558_s30  ;;  %s207_s22 = scalar_lea.vmem [#allocation5], %s539_s29 }
  0x1e   : > { %s190_s6 = scalar_lea.hbm %s1023_s0, %s558_s30  ;;  %p226_p3 = pnand %p545_p1, %p225_p2 }
  0x1f   : > { %s191_s9 = sshll.u32 %s190_s6, 4  ;;  %s215_s5 = sshll.u32 %s214_s4, 4  ;;  %s192_s9 = int_to_ptr.hbm [resolvable:$true] %s191_s9  ;;  %s216_s5 = int_to_ptr.hbm [resolvable:$true] %s215_s5 }
  0x20   : > { %573 = dma.hbm_to_vmem [thread:$0]  (!%p917_p0), %s192_s9, 512, %s194_s8, %s180_s11, %s819_s18, %s819_s18, %s820_s19  }
  0x21   : > { %s217_s6 = sshll.u32 %s207_s22, 4  ;;  %s204_s7 = scalar_lea.sflag [#allocation6], %s908_s28  ;;  %s218_s6 = int_to_ptr.vmem [resolvable:$true] %s217_s6 }
  0x22   : > { %576 = dma.hbm_to_vmem [thread:$0]  (!%p917_p0), %s216_s5, 512, %s218_s6, %s204_s7, %s819_s18, %s819_s18, %s820_s19  }
  0x23   : > { %229 = sbr.rel (%p226_p3) target bundleno = 73 (0x49), region = 28  ;;  %s933_s0 = sand.u32 (!%p226_p3), 1, %s801_s13  }
  0x24   : > { %s936_s8 = sshll.u32 (!%p226_p3), %s933_s0, 5  ;;  %s232_s30 = scalar_lea.sflag (!%p226_p3), [#allocation3], %s933_s0 }
  0x25   : > { %s235_s9 = scalar_lea.vmem (!%p226_p3), [#allocation2], %s936_s8 }
  0x28   : > { %780 = dma.done.wait (%p890_p8), %s232_s30, 512  }
  0x29   : > { %782 = vsyncadd (%p890_p8), %s232_s30, 4294966784  ;;  %s242_s28 = scalar_lea.sflag [#allocation6], %s933_s0  ;;  %s245_s29 = scalar_lea.vmem [#allocation5], %s936_s8 }
  0x2a   : > { %784 = dma.done.wait (%p890_p8), %s242_s28, 512  }
  0x2b   : > { %786 = vsyncadd (%p890_p8), %s242_s28, 4294966784  ;;  %v293_v0 = vld [vmem:[%s235_s9] sm:$0xff]  ;;  %v294_v2 = vld [vmem:[%s235_s9 + $0x8] sm:$0xff]  ;;  %s560_s10 = sshll.u32 %s809_s15, 5  ;;  %s271_s19 = scalar_lea.vmem [#allocation7], %s936_s8 }
  0x2c   : > { %v297_v1 = vld [vmem:[%s245_s29] sm:$0xff]  ;;  %v298_v4 = vld [vmem:[%s245_s29 + $0x8] sm:$0xff]  ;;  %v295_v5 = vld [vmem:[%s235_s9 + $0x10] sm:$0xff]  ;;  %s360_s18 = scalar_lea.hbm %s1016_s2, %s560_s10  ;;  %s361_s15 = sshll.u32 %s271_s19, 4  ;;  %s958_s15 = int_to_ptr.vmem [resolvable:$true] %s361_s15 }
  0x2d   : > { %v301_v3 = vmul.f32 %v297_v1, %v293_v0  ;;  %v299_v6 = vld [vmem:[%s245_s29 + $0x10] sm:$0xff]  ;;  %v313_v7 = vadd.f32 %v297_v1, %v293_v0  ;;  %v302_v8 = vmul.f32 %v298_v4, %v294_v2  ;;  %v296_v10 = vld [vmem:[%s235_s9 + $0x18] sm:$0xff]  ;;  %v314_v12 = vadd.f32 %v298_v4, %v294_v2  ;;  %s379_s4 = scalar_lea.hbm %s1017_s3, %s560_s10  ;;  %s363_s5 = sshll.u32 %s360_s18, 4  ;;  %s364_s5 = int_to_ptr.hbm [resolvable:$true] %s363_s5 }
  0x2e   : > { %v303_v9 = vmul.f32 %v299_v6, %v295_v5  ;;  %v300_v11 = vld [vmem:[%s245_s29 + $0x18] sm:$0xff]  ;;  %v315_v14 = vadd.f32 %v299_v6, %v295_v5  ;;  %s278_s22 = scalar_lea.vmem [#allocation8], %s936_s8  ;;  %s382_s7 = sshll.u32 %s379_s4, 4  ;;  %s963_s7 = int_to_ptr.hbm [resolvable:$true] %s382_s7 }
  0x2f   : > { %v304_v13 = vmul.f32 %v300_v11, %v296_v10  ;;  %v316_v15 = vadd.f32 %v300_v11, %v296_v10  ;;  %325 = vst [vmem:[%s271_s19] sm:$0xff] %v301_v3  ;;  %s380_s6 = sshll.u32 %s278_s22, 4  ;;  %s342_s30 = scalar_lea.sflag [#allocation4], %s933_s0  ;;  %s961_s6 = int_to_ptr.vmem [resolvable:$true] %s380_s6 }
  0x30   : > { %326 = vst [vmem:[%s271_s19 + $0x8] sm:$0xff] %v302_v8  ;;  %s713_s9 = sshra.s32 %s364_s5, 4  ;;  %s719_s10 = scalar_lea.hbm %s1016_s2, 64  ;;  %s714_s9 = int_to_ptr.hbm [resolvable:$true] %s713_s9 }
  0x31   : > { %327 = vst [vmem:[%s271_s19 + $0x10] sm:$0xff] %v303_v9  ;;  %s715_s28 = scalar_lea.hbm %s714_s9, 32  ;;  %p720_p7 = scmp.lt.s32.totalorder %s714_s9, %s1016_s2 }
  0x32   : > { %328 = vst [vmem:[%s271_s19 + $0x18] sm:$0xff] %v304_v13  ;;  %p716_p4 = scmp.ne.s32.totalorder %s714_s9, %s715_s28  ;;  %p721_p8 = scmp.lt.s32.totalorder %s719_s10, %s715_s28 }
  0x33   : > { %337 = vst [vmem:[%s278_s22] sm:$0xff] %v313_v7 }
  0x34   : > { %338 = vst [vmem:[%s278_s22 + $0x8] sm:$0xff] %v314_v12  ;;  %p717_p5 = pnand %p716_p4, %p894_p9  ;;  %p722_p10 = por %p721_p8, %p720_p7 }
  0x35   : > { %339 = vst [vmem:[%s278_s22 + $0x10] sm:$0xff] %v315_v14 }
  0x36   : > { %340 = vst [vmem:[%s278_s22 + $0x18] sm:$0xff] %v316_v15  ;;  %p718_p6 = pneg %p717_p5 }
  0x38   : > { %p723_p13 = pnand %p722_p10, %p718_p6 }
  0x3a   : > { %726 = shalt.err (!%p723_p13)
}
  0x3b   : > { %s821_s18 = smov 128   ;;  %s822_s19 = smov 8  }
  0x3c   : > { %566 = dma.vmem_to_hbm [thread:$0]  (%p894_p9), %s958_s15, 512, %s364_s5, %s342_s30, %s821_s18, %s821_s18, %s822_s19  }
  0x3d   : > { %s347_s21 = scalar_lea.sflag [#allocation9], %s933_s0  ;;  %s741_s23 = sshra.s32 %s963_s7, 4  ;;  %s742_s23 = int_to_ptr.hbm [resolvable:$true] %s741_s23 }
  0x3e   : > { %s743_s4 = scalar_lea.hbm %s742_s23, 32  ;;  %s747_s28 = scalar_lea.hbm %s1017_s3, 64 }
  0x3f   : > { %p744_p0 = scmp.ne.s32.totalorder %s742_s23, %s743_s4  ;;  %p748_p3 = scmp.lt.s32.totalorder %s742_s23, %s1017_s3 }
  0x40   : > { %p749_p4 = scmp.lt.s32.totalorder %s747_s28, %s743_s4 }
  0x41   : > { %p745_p1 = pnand %p744_p0, %p894_p9 }
  0x42   : > { %p750_p5 = por %p749_p4, %p748_p3 }
  0x43   : > { %p746_p2 = pneg %p745_p1 }
  0x45   : > { %p751_p6 = pnand %p750_p5, %p746_p2 }
  0x47   : > { %754 = shalt.err (!%p751_p6)
}
  0x48   : > { %567 = dma.vmem_to_hbm [thread:$0]  (%p894_p9), %s961_s6, 512, %s963_s7, %s347_s21, %s821_s18, %s821_s18, %s822_s19  }
  0x49 PF: > { %s397_s0 = sand.u32 1, %s797_s12   ;;  %p578_p7 = pnand %p538_p12, %p901_p11 }
  0x4a   : > { %s398_s15 = scalar_lea.sflag [#allocation4], %s397_s0 }
  0x4b   : > { %p579_p8 = pneg %p578_p7 }
  0x4d   : > { %788 = dma.done.wait (%p579_p8), %s398_s15, 512  }
  0x4e   : > { %790 = vsyncadd (%p579_p8), %s398_s15, 4294966784  ;;  %s408_s5 = scalar_lea.sflag [#allocation9], %s397_s0 }
  0x4f   : > { %792 = dma.done.wait (%p579_p8), %s408_s5, 512  }
  0x50   : > { %794 = vsyncadd (%p579_p8), %s408_s5, 4294966784  ;;  %s26_s17 = sadd.s32 1, %s817_s17   ;;  %s1025_s12 = smov %s801_s13 }
  0x51   : > { %p23_p10 = scmp.ge.s32.totalorder %s26_s17, 4   ;;  %s1026_s13 = smov %s805_s14 }
  0x52   : > { %s1027_s14 = smov %s899_s26  ;;  %s1028_s15 = smov %s813_s16 }
  0x53   : > { %s1029_s16 = smov %s1031_s20  ;;  %25 = sbr.rel (!%p23_p10) target bundleno = 12 (0xc), region = 107 }
  0x58   :  { %414 = vsyncpa [#allocation3], 1 }
  0x59   :  { %416 = vsyncpa [#allocation3 + $0x1], 1 }
  0x5a   :  { %417 = vsyncpa [#allocation6], 1 }
  0x5b   :  { %419 = vsyncpa [#allocation6 + $0x1], 1 }
  0x5c   :  { %420 = vsyncpa [#allocation4], 1 }
  0x5d   :  { %422 = vsyncpa [#allocation4 + $0x1], 1 }
  0x5e   :  { %423 = vsyncpa [#allocation9], 1 }
  0x5f   :  { %425 = vsyncpa [#allocation9 + $0x1], 1 }

</bundles_post_ra>
